<compile_context>
chip_gen: v6e
topology: v6e:2x2x1
jax: 0.10.0
libtpu: 0.0.40
codegen_flags: <defaults>
</compile_context>

<pallas_src>
import functools

import jax
import jax.numpy as jnp
from jax.experimental import pallas as pl
from jax.experimental.pallas import tpu as pltpu

LANE = 128          # lane width (last dim)
BATCH_ALIGN = 16    # bf16 packed vreg tile is (16, 128)


def _round_up(v, m):
    return (v + m - 1) // m * m


def _vmem_capacity_bytes():
    """Per-core VMEM capacity; conservative 64 MiB fallback (fits every gen)."""
    try:
        cap = int(pltpu.get_tpu_info().vmem_capacity_bytes)
        if cap > 0:
            return cap
    except Exception:
        pass
    return 64 * 1024 * 1024


def _ffnn_kernel(n_layers, num_labels, matmul_dtype, *refs):
    """Fused MLP + log_softmax on one (batch-tile, K-tile) grid cell.

    refs = (x_ref, w0_ref, b0_ref, w1_ref, b1_ref, ..., out_ref, acc_ref)
      x_ref   : (TB, TK)            input dtype (f32); cast to bf16 in-kernel
      w0_ref  : (TK, h0p)           matmul dtype, zero-padded, K-tiled
      w_i>0   : (d_ip, d_{i+1}p)    matmul dtype, zero-padded, VMEM-resident
      b_i     : (1, d_{i+1}p)       float32, zero-padded
      out_ref : (TB, Lp)            out dtype (padded label cols hold -inf)
      acc_ref : (TB, h0p) float32   layer-0 K-accumulation scratch
    """
    x_ref = refs[0]
    out_ref = refs[-2]
    acc_ref = refs[-1]
    param_refs = refs[1:-2]

    k = pl.program_id(1)

    @pl.when(k == 0)
    def _init():
        acc_ref[...] = jnp.zeros_like(acc_ref)

    # Layer 0, K-tiled: bf16 MXU matmul with f32 accumulation.  The f32->bf16
    # cast of x runs on the VPU and hides under the MXU.
    x = x_ref[...].astype(matmul_dtype)
    acc_ref[...] += jnp.dot(x, param_refs[0][...],
                            preferred_element_type=jnp.float32)

    @pl.when(k == pl.num_programs(1) - 1)
    def _finalize():
        z = acc_ref[...] + param_refs[1][...]            # f32 bias add
        if n_layers == 1:
            logits = z
        else:
            # NOTE: padded hidden columns become sigmoid(0) = 0.5; this is
            # harmless ONLY because the next layer's padded weight ROWS are
            # zero (guaranteed by prepare_params). Keep the padding zero.
            out = jax.nn.sigmoid(z).astype(matmul_dtype)
            logits = None
            for i in range(1, n_layers):                 # static -> unrolled
                w = param_refs[2 * i][...]
                b = param_refs[2 * i + 1][...]
                z = jnp.dot(out, w, preferred_element_type=jnp.float32) + b
                if i != n_layers - 1:
                    out = jax.nn.sigmoid(z).astype(matmul_dtype)
                else:
                    logits = z

        # Mask zero-padded label columns so they don't perturb the softmax.
        if logits.shape[-1] > num_labels:
            col = jax.lax.broadcasted_iota(jnp.int32, logits.shape, 1)
            logits = jnp.where(col < num_labels, logits, -jnp.inf)

        # Numerically stable log_softmax in f32; lane-dense store.
        m = jnp.max(logits, axis=-1, keepdims=True)
        shifted = logits - m
        lse = jnp.log(jnp.sum(jnp.exp(shifted), axis=-1, keepdims=True))
        out_ref[...] = (shifted - lse).astype(out_ref.dtype)


def prepare_params(weights, biases, matmul_dtype=jnp.bfloat16):
    """Pad feature dims to 128-lane multiples and cast to the MXU dtype ONCE.

    Hoisted out of the per-call hot path: padding/casting the whole weight set
    is a full HBM pass and must not be repeated every forward call.

    Zero padding is load-bearing: padded hidden columns become sigmoid(0)=0.5
    downstream and are cancelled only because the padded weight ROWS of the
    next layer are zero.
    """
    assert len(weights) == len(biases) and len(weights) >= 1
    dims = [weights[0].shape[0]] + [w.shape[1] for w in weights]
    pdims = [_round_up(d, LANE) for d in dims]
    pw, pb = [], []
    for i, (w, b) in enumerate(zip(weights, biases)):
        assert w.shape == (dims[i], dims[i + 1])
        w_p = jnp.pad(w.astype(matmul_dtype),
                      ((0, pdims[i] - dims[i]), (0, pdims[i + 1] - dims[i + 1])))
        b_p = jnp.pad(b.astype(jnp.float32),
                      (0, pdims[i + 1] - dims[i + 1])).reshape(1, pdims[i + 1])
        pw.append(w_p)
        pb.append(b_p)
    return dict(weights=pw, biases=pb, dims=dims, pdims=pdims,
                num_labels=dims[-1], n_layers=len(weights),
                matmul_dtype=matmul_dtype)


def _footprint_bytes(bb, bk, pdims, n_layers, msize, osize):
    """Estimated resident VMEM (per TensorCore) at the given tiling."""
    ktiles = pdims[0] // bk
    f = 2 * bb * bk * 4                                    # x tile, f32, 2 buffers
    f += 2 * bb * pdims[-1] * osize                        # out tile, 2 buffers
    f += bb * pdims[1] * 4                                 # layer-0 f32 accumulator
    f += (2 if ktiles > 1 else 1) * bk * pdims[1] * msize  # W0
    f += pdims[1] * 4                                      # b0 (single buffer)
    for i in range(1, n_layers):                           # resident, single buffer
        f += pdims[i] * pdims[i + 1] * msize + pdims[i + 1] * 4
    return f


def _choose_tiles(batch, pdims, n_layers, msize, osize, budget,
                  block_batch, block_k):
    vp = pdims[0]
    n128 = vp // LANE
    # K-tile candidates: multiples of 128 that divide the padded vocab, largest first.
    divisors = [d * LANE for d in range(n128, 0, -1) if n128 % d == 0]

    user_bb = block_batch is not None
    if user_bb:
        bb = max(BATCH_ALIGN, _round_up(int(block_batch), BATCH_ALIGN))
    elif batch <= BATCH_ALIGN:
        bb = BATCH_ALIGN
    else:
        # Up to 512 rows/tile; cap at ~batch/2 so the grid has >= 2 batch steps
        # and v7x's second TensorCore gets work.
        bb = min(512, _round_up(pl.cdiv(batch, 2), BATCH_ALIGN))

    if block_k is not None:
        bk = _round_up(int(block_k), LANE)
        if vp % bk != 0:
            bk = next(d for d in divisors if d <= bk)      # largest divisor <= request
        return bb, bk

    while True:
        for bk in divisors:                                # prefer the largest K tile
            if _footprint_bytes(bb, bk, pdims, n_layers, msize, osize) <= budget:
                return bb, bk
        if user_bb or bb <= BATCH_ALIGN:
            return bb, divisors[-1]                        # best effort
        bb = max(BATCH_ALIGN, _round_up(bb // 2, BATCH_ALIGN))


def ffnn_forward(x, params, *, block_batch=None, block_k=None,
                 out_dtype=jnp.float32,
                 vmem_headroom_bytes=16 * 1024 * 1024,
                 budget_fraction=0.75):
    """Run the fused feed-forward + log_softmax kernel on prepared params."""
    weights, biases = params["weights"], params["biases"]
    dims, pdims = params["dims"], params["pdims"]
    n_layers, num_labels = params["n_layers"], params["num_labels"]
    mdt = params["matmul_dtype"]

    batch, vocab = x.shape
    assert vocab == dims[0], f"x feature dim {vocab} != vocab_size {dims[0]}"
    vp, lp = pdims[0], pdims[-1]

    # Per-generation VMEM budget (64 MiB/TC on v7x, 128 MiB on v5e/v6e).
    cap = _vmem_capacity_bytes()
    vmem_limit = int(min(cap, max(32 * 1024 * 1024, cap - vmem_headroom_bytes)))
    budget = int(budget_fraction * vmem_limit)

    msize = jnp.dtype(mdt).itemsize
    osize = jnp.dtype(out_dtype).itemsize
    bb, bk = _choose_tiles(batch, pdims, n_layers, msize, osize, budget,
                           block_batch, block_k)
    ktiles = vp // bk
    nb = pl.cdiv(batch, bb)

    # Keep x in its original dtype (bf16 cast happens on the VPU in-kernel) and
    # only lane-pad the feature dim when needed.  No batch padding: the ragged
    # last batch tile is row-independent garbage whose output stores Pallas masks.
    x_in = x if vp == vocab else jnp.pad(x, ((0, 0), (0, vp - vocab)))
    args = [x_in] + [p for li in range(n_layers) for p in (weights[li], biases[li])]

    rows = nb * bb
    flops = 2 * rows * sum(pdims[i] * pdims[i + 1] for i in range(n_layers))
    transcendentals = rows * (sum(pdims[1:-1]) + lp)       # sigmoids + softmax exp
    bytes_accessed = (int(x_in.size) * x_in.dtype.itemsize
                      + sum(int(a.size) * a.dtype.itemsize for a in args[1:])
                      + batch * lp * osize)

    def _run(use_single_buffer):
        resident = pl.Buffered(1) if use_single_buffer else None
        in_specs = [pl.BlockSpec((bb, bk), lambda i, k: (i, k))]
        for li in range(n_layers):
            if li == 0:
                w_spec = pl.BlockSpec(
                    (bk, pdims[1]), lambda i, k: (k, 0),
                    pipeline_mode=(resident if ktiles == 1 else None))
            else:
                w_spec = pl.BlockSpec((pdims[li], pdims[li + 1]),
                                      lambda i, k: (0, 0), pipeline_mode=resident)
            b_spec = pl.BlockSpec((1, pdims[li + 1]), lambda i, k: (0, 0),
                                  pipeline_mode=resident)
            in_specs += [w_spec, b_spec]

        return pl.pallas_call(
            functools.partial(_ffnn_kernel, n_layers, num_labels, mdt),
            out_shape=jax.ShapeDtypeStruct((batch, lp), out_dtype),
            grid=(nb, ktiles),
            in_specs=in_specs,
            out_specs=pl.BlockSpec((bb, lp), lambda i, k: (i, 0)),
            scratch_shapes=[pltpu.VMEM((bb, pdims[1]), jnp.float32)],
            compiler_params=pltpu.CompilerParams(
                dimension_semantics=("parallel", "arbitrary"),
                vmem_limit_bytes=vmem_limit),
            cost_estimate=pl.CostEstimate(flops=int(flops),
                                          transcendentals=int(transcendentals),
                                          bytes_accessed=int(bytes_accessed)),
        )(*args)

    try:
        out = _run(True)
    except Exception:
        # Fallback for environments without BlockSpec pipeline_mode / single-buffer
        # support; functionally identical, just uses default double buffering.
        out = _run(False)

    return out[:, :num_labels]


def ffnn_multiple_layers(x, weights, biases, *, matmul_dtype=jnp.bfloat16, **kwargs):
    """One-shot convenience wrapper.  In real use, call prepare_params() once
    and ffnn_forward() per call to avoid re-padding/casting the weights."""
    return ffnn_forward(x, prepare_params(weights, biases, matmul_dtype), **kwargs)


def init_params(key, vocab_size, layer_config, num_labels):
    """Deterministic parameter init matching the module's layer shapes."""
    sizes = [vocab_size] + list(layer_config) + [num_labels]
    weights, biases = [], []
    for i in range(len(sizes) - 1):
        key, kw, kb = jax.random.split(key, 3)
        fan_in, fan_out = sizes[i], sizes[i + 1]
        # Stored as (in, out) = transpose of PyTorch's nn.Linear weight.
        w = jax.random.normal(kw, (fan_in, fan_out), jnp.float32) * 0.1
        b = jax.random.normal(kb, (fan_out,), jnp.float32) * 0.01
        weights.append(w)
        biases.append(b)
    return weights, biases


def reference_forward(x, weights, biases, matmul_dtype=jnp.float32):
    """Pure-JAX reference (optionally mimicking the kernel's bf16 matmuls)."""
    out = x
    for i, (w, b) in enumerate(zip(weights, biases)):
        out = jnp.dot(out.astype(matmul_dtype), w.astype(matmul_dtype),
                      preferred_element_type=jnp.float32) + b
        if i != len(weights) - 1:
            out = jax.nn.sigmoid(out)
    return jax.nn.log_softmax(out, axis=-1)


if __name__ == "__main__":
    key = jax.random.PRNGKey(0)

    # --- Test 1: small shapes, fully-resident weights (single K tile) -------
    batch, vocab_size, layer_config, num_labels = 8, 128, [64, 32], 8
    key, kx, kp = jax.random.split(key, 3)
    x = jax.random.normal(kx, (batch, vocab_size), jnp.float32)
    weights, biases = init_params(kp, vocab_size, layer_config, num_labels)

    params = prepare_params(weights, biases)          # pad/cast hoisted, done once
    out = jax.block_until_ready(ffnn_forward(x, params))
    assert out.shape == (batch, num_labels)

    ref16 = reference_forward(x, weights, biases, jnp.bfloat16)
    assert jnp.allclose(out, ref16, atol=1e-3, rtol=1e-3), "mismatch vs bf16 ref"
    ref32 = reference_forward(x, weights, biases, jnp.float32)
    assert jnp.allclose(out, ref32, atol=5e-2, rtol=5e-2), "mismatch vs f32 ref"
    assert jnp.allclose(jnp.sum(jnp.exp(out), axis=-1), 1.0, atol=1e-4)

    # --- Test 2: forced K-tiling + ragged batch tile + non-128 feature dims --
    batch2, vocab2, layer_config2, num_labels2 = 20, 256, [48, 32], 10
    key, kx2, kp2 = jax.random.split(key, 3)
    x2 = jax.random.normal(kx2, (batch2, vocab2), jnp.float32)
    w2, b2 = init_params(kp2, vocab2, layer_config2, num_labels2)

    p2 = prepare_params(w2, b2)
    out2 = jax.block_until_ready(
        ffnn_forward(x2, p2, block_batch=16, block_k=128))   # 2 K tiles, ragged batch
    assert out2.shape == (batch2, num_labels2)

    ref16_2 = reference_forward(x2, w2, b2, jnp.bfloat16)
    assert jnp.allclose(out2, ref16_2, atol=2e-3, rtol=2e-3), "K-tiled mismatch"
    assert jnp.allclose(jnp.sum(jnp.exp(out2), axis=-1), 1.0, atol=1e-4)

    print("KERNEL_OK")
</pallas_src>

<mosaic_0001>
module attributes {stable_mosaic.version = 11 : i64} {
  func.func @_ffnn_kernel(%arg0: i32, %arg1: i32, %arg2: memref<16x128xf32, #tpu.memory_space<vmem>>, %arg3: memref<128x128xbf16, #tpu.memory_space<vmem>>, %arg4: memref<1x128xf32, #tpu.memory_space<vmem>>, %arg5: memref<128x128xbf16, #tpu.memory_space<vmem>>, %arg6: memref<1x128xf32, #tpu.memory_space<vmem>>, %arg7: memref<128x128xbf16, #tpu.memory_space<vmem>>, %arg8: memref<1x128xf32, #tpu.memory_space<vmem>>, %arg9: memref<16x128xf32, #tpu.memory_space<vmem>>, %arg10: memref<16x128xf32, #tpu.memory_space<vmem>>) attributes {dimension_semantics = [#tpu.dimension_semantics<parallel>, #tpu.dimension_semantics<arbitrary>], iteration_bounds = array<i64: 1, 1>, scalar_prefetch = 0 : i64, scratch_operands = 1 : i64, tpu.core_type = #tpu.core_type<tc>, window_params = [{transform_indices = @transform_0, window_bounds = array<i64: 16, 128>}, {pipeline_mode = #tpu.pipeline_mode<synchronous>, transform_indices = @transform_1, window_bounds = array<i64: 128, 128>}, {pipeline_mode = #tpu.pipeline_mode<synchronous>, transform_indices = @transform_2, window_bounds = array<i64: 1, 128>}, {pipeline_mode = #tpu.pipeline_mode<synchronous>, transform_indices = @transform_3, window_bounds = array<i64: 128, 128>}, {pipeline_mode = #tpu.pipeline_mode<synchronous>, transform_indices = @transform_4, window_bounds = array<i64: 1, 128>}, {pipeline_mode = #tpu.pipeline_mode<synchronous>, transform_indices = @transform_5, window_bounds = array<i64: 128, 128>}, {pipeline_mode = #tpu.pipeline_mode<synchronous>, transform_indices = @transform_6, window_bounds = array<i64: 1, 128>}, {transform_indices = @transform_7, window_bounds = array<i64: 16, 128>}]} {
    %c0_i32 = arith.constant 0 : i32
    %0 = arith.cmpi eq, %arg1, %c0_i32 : i32
    %1 = arith.extui %0 : i1 to i32
    %c0_i32_0 = arith.constant 0 : i32
    %2 = arith.cmpi ne, %1, %c0_i32_0 : i32
    scf.if %2 {
      %cst_10 = arith.constant 0.000000e+00 : f32
      %13 = vector.broadcast %cst_10 : f32 to vector<16x128xf32>
      %c0_11 = arith.constant 0 : index
      %c0_12 = arith.constant 0 : index
      %14 = vector.load %arg10[%c0_11, %c0_12] : memref<16x128xf32, #tpu.memory_space<vmem>>, vector<16x128xf32>
      tpu.vector_store %arg10[%c0_11, %c0_12], %13 {strides = array<i32>} : memref<16x128xf32, #tpu.memory_space<vmem>>, vector<16x128xf32>,
    } else {
    }
    %c0 = arith.constant 0 : index
    %c0_1 = arith.constant 0 : index
    %3 = vector.load %arg2[%c0, %c0_1] : memref<16x128xf32, #tpu.memory_space<vmem>>, vector<16x128xf32>
    %4 = arith.truncf %3 : vector<16x128xf32> to vector<16x128xbf16>
    %c0_2 = arith.constant 0 : index
    %c0_3 = arith.constant 0 : index
    %5 = vector.load %arg10[%c0_2, %c0_3] : memref<16x128xf32, #tpu.memory_space<vmem>>, vector<16x128xf32>
    %c0_4 = arith.constant 0 : index
    %c0_5 = arith.constant 0 : index
    %6 = vector.load %arg3[%c0_4, %c0_5] : memref<128x128xbf16, #tpu.memory_space<vmem>>, vector<128x128xbf16>
    %cst = arith.constant dense<0.000000e+00> : vector<16x128xf32>
    %7 = tpu.matmul %4, %6, %cst {dimension_numbers = #tpu.dot_dimension_numbers<[1], [0], [0], [1], [0, 0, 1, 1], [], []>} : vector<16x128xbf16>, vector<128x128xbf16>, vector<16x128xf32> -> vector<16x128xf32>
    %8 = arith.addf %5, %7 : vector<16x128xf32>
    %c0_6 = arith.constant 0 : index
    %c0_7 = arith.constant 0 : index
    %9 = vector.load %arg10[%c0_6, %c0_7] : memref<16x128xf32, #tpu.memory_space<vmem>>, vector<16x128xf32>
    tpu.vector_store %arg10[%c0_6, %c0_7], %8 {strides = array<i32>} : memref<16x128xf32, #tpu.memory_space<vmem>>, vector<16x128xf32>,
    %c0_i32_8 = arith.constant 0 : i32
    %10 = arith.cmpi eq, %arg1, %c0_i32_8 : i32
    %11 = arith.extui %10 : i1 to i32
    %c0_i32_9 = arith.constant 0 : i32
    %12 = arith.cmpi ne, %11, %c0_i32_9 : i32
    scf.if %12 {
      %c0_10 = arith.constant 0 : index
      %c0_11 = arith.constant 0 : index
      %13 = vector.load %arg10[%c0_10, %c0_11] : memref<16x128xf32, #tpu.memory_space<vmem>>, vector<16x128xf32>
      %c0_12 = arith.constant 0 : index
      %c0_13 = arith.constant 0 : index
      %14 = vector.load %arg4[%c0_12, %c0_13] : memref<1x128xf32, #tpu.memory_space<vmem>>, vector<1x128xf32>
      %15 = vector.broadcast %14 : vector<1x128xf32> to vector<16x128xf32>
      %16 = arith.addf %13, %15 : vector<16x128xf32>
      %17 = arith.negf %16 : vector<16x128xf32>
      %18 = math.exp %17 : vector<16x128xf32>
      %cst_14 = arith.constant 1.000000e+00 : f32
      %19 = vector.broadcast %cst_14 : f32 to vector<16x128xf32>
      %20 = arith.addf %19, %18 : vector<16x128xf32>
      %21 = arith.divf %19, %20 : vector<16x128xf32>
      %22 = arith.truncf %21 : vector<16x128xf32> to vector<16x128xbf16>
      %c0_15 = arith.constant 0 : index
      %c0_16 = arith.constant 0 : index
      %23 = vector.load %arg5[%c0_15, %c0_16] : memref<128x128xbf16, #tpu.memory_space<vmem>>, vector<128x128xbf16>
      %c0_17 = arith.constant 0 : index
      %c0_18 = arith.constant 0 : index
      %24 = vector.load %arg6[%c0_17, %c0_18] : memref<1x128xf32, #tpu.memory_space<vmem>>, vector<1x128xf32>
      %cst_19 = arith.constant dense<0.000000e+00> : vector<16x128xf32>
      %25 = tpu.matmul %22, %23, %cst_19 {dimension_numbers = #tpu.dot_dimension_numbers<[1], [0], [0], [1], [0, 0, 1, 1], [], []>} : vector<16x128xbf16>, vector<128x128xbf16>, vector<16x128xf32> -> vector<16x128xf32>
      %26 = vector.broadcast %24 : vector<1x128xf32> to vector<16x128xf32>
      %27 = arith.addf %25, %26 : vector<16x128xf32>
      %28 = arith.negf %27 : vector<16x128xf32>
      %29 = math.exp %28 : vector<16x128xf32>
      %cst_20 = arith.constant 1.000000e+00 : f32
      %30 = vector.broadcast %cst_20 : f32 to vector<16x128xf32>
      %31 = arith.addf %30, %29 : vector<16x128xf32>
      %32 = arith.divf %30, %31 : vector<16x128xf32>
      %33 = arith.truncf %32 : vector<16x128xf32> to vector<16x128xbf16>
      %c0_21 = arith.constant 0 : index
      %c0_22 = arith.constant 0 : index
      %34 = vector.load %arg7[%c0_21, %c0_22] : memref<128x128xbf16, #tpu.memory_space<vmem>>, vector<128x128xbf16>
      %c0_23 = arith.constant 0 : index
      %c0_24 = arith.constant 0 : index
      %35 = vector.load %arg8[%c0_23, %c0_24] : memref<1x128xf32, #tpu.memory_space<vmem>>, vector<1x128xf32>
      %cst_25 = arith.constant dense<0.000000e+00> : vector<16x128xf32>
      %36 = tpu.matmul %33, %34, %cst_25 {dimension_numbers = #tpu.dot_dimension_numbers<[1], [0], [0], [1], [0, 0, 1, 1], [], []>} : vector<16x128xbf16>, vector<128x128xbf16>, vector<16x128xf32> -> vector<16x128xf32>
      %37 = vector.broadcast %35 : vector<1x128xf32> to vector<16x128xf32>
      %38 = arith.addf %36, %37 : vector<16x128xf32>
      %39 = tpu.iota {dimensions = array<i32: 1>} : vector<16x128xi32>
      %c8_i32 = arith.constant 8 : i32
      %40 = vector.broadcast %c8_i32 : i32 to vector<16x128xi32>
      %41 = arith.cmpi slt, %39, %40 : vector<16x128xi32>
      %cst_26 = arith.constant 0xFF800000 : f32
      %42 = vector.broadcast %cst_26 : f32 to vector<16x128xf32>
      %43 = arith.select %41, %38, %42 : vector<16x128xi1>, vector<16x128xf32>
      %cst_27 = arith.constant dense<0xFF800000> : vector<16xf32>
      %44 = vector.multi_reduction <maximumf>, %43, %cst_27 [1] : vector<16x128xf32> to vector<16xf32>
      %45 = vector.shape_cast %44 : vector<16xf32> to vector<16x1xf32>
      %46 = vector.broadcast %45 : vector<16x1xf32> to vector<16x128xf32>
      %47 = arith.subf %43, %46 : vector<16x128xf32>
      %48 = math.exp %47 : vector<16x128xf32>
      %cst_28 = arith.constant dense<0.000000e+00> : vector<16xf32>
      %49 = vector.multi_reduction <add>, %48, %cst_28 [1] : vector<16x128xf32> to vector<16xf32>
      %50 = vector.shape_cast %49 : vector<16xf32> to vector<16x1xf32>
      %51 = math.log %50 : vector<16x1xf32>
      %52 = vector.broadcast %51 : vector<16x1xf32> to vector<16x128xf32>
      %53 = arith.subf %47, %52 : vector<16x128xf32>
      %c0_29 = arith.constant 0 : index
      %c0_30 = arith.constant 0 : index
      %54 = vector.load %arg9[%c0_29, %c0_30] : memref<16x128xf32, #tpu.memory_space<vmem>>, vector<16x128xf32>
      tpu.vector_store %arg9[%c0_29, %c0_30], %53 {strides = array<i32>} : memref<16x128xf32, #tpu.memory_space<vmem>>, vector<16x128xf32>,
    } else {
    }
    return
  }
  func.func @transform_0(%arg0: i32, %arg1: i32) -> (i32, i32) {
    %c0_i32 = arith.constant 0 : i32
    return %arg0, %arg1 : i32, i32
  }
  func.func @transform_1(%arg0: i32, %arg1: i32) -> (i32, i32) {
    %c0_i32 = arith.constant 0 : i32
    %c0_i32_0 = arith.constant 0 : i32
    return %arg1, %c0_i32 : i32, i32
  }
  func.func @transform_2(%arg0: i32, %arg1: i32) -> (i32, i32) {
    %c0_i32 = arith.constant 0 : i32
    %c0_i32_0 = arith.constant 0 : i32
    %c0_i32_1 = arith.constant 0 : i32
    return %c0_i32, %c0_i32_0 : i32, i32
  }
  func.func @transform_3(%arg0: i32, %arg1: i32) -> (i32, i32) {
    %c0_i32 = arith.constant 0 : i32
    %c0_i32_0 = arith.constant 0 : i32
    %c0_i32_1 = arith.constant 0 : i32
    return %c0_i32, %c0_i32_0 : i32, i32
  }
  func.func @transform_4(%arg0: i32, %arg1: i32) -> (i32, i32) {
    %c0_i32 = arith.constant 0 : i32
    %c0_i32_0 = arith.constant 0 : i32
    %c0_i32_1 = arith.constant 0 : i32
    return %c0_i32, %c0_i32_0 : i32, i32
  }
  func.func @transform_5(%arg0: i32, %arg1: i32) -> (i32, i32) {
    %c0_i32 = arith.constant 0 : i32
    %c0_i32_0 = arith.constant 0 : i32
    %c0_i32_1 = arith.constant 0 : i32
    return %c0_i32, %c0_i32_0 : i32, i32
  }
  func.func @transform_6(%arg0: i32, %arg1: i32) -> (i32, i32) {
    %c0_i32 = arith.constant 0 : i32
    %c0_i32_0 = arith.constant 0 : i32
    %c0_i32_1 = arith.constant 0 : i32
    return %c0_i32, %c0_i32_0 : i32, i32
  }
  func.func @transform_7(%arg0: i32, %arg1: i32) -> (i32, i32) {
    %c0_i32 = arith.constant 0 : i32
    %c0_i32_0 = arith.constant 0 : i32
    return %arg0, %c0_i32 : i32, i32
  }
}

module attributes {stable_mosaic.version = 11 : i64} {
  func.func @_ffnn_kernel(%arg0: i32, %arg1: i32, %arg2: memref<16x128xf32, #tpu.memory_space<vmem>>, %arg3: memref<128x128xbf16, #tpu.memory_space<vmem>>, %arg4: memref<1x128xf32, #tpu.memory_space<vmem>>, %arg5: memref<128x128xbf16, #tpu.memory_space<vmem>>, %arg6: memref<1x128xf32, #tpu.memory_space<vmem>>, %arg7: memref<128x128xbf16, #tpu.memory_space<vmem>>, %arg8: memref<1x128xf32, #tpu.memory_space<vmem>>, %arg9: memref<16x128xf32, #tpu.memory_space<vmem>>, %arg10: memref<16x128xf32, #tpu.memory_space<vmem>>) attributes {dimension_semantics = [#tpu.dimension_semantics<parallel>, #tpu.dimension_semantics<arbitrary>], iteration_bounds = array<i64: 1, 1>, scalar_prefetch = 0 : i64, scratch_operands = 1 : i64, tpu.core_type = #tpu.core_type<tc>, window_params = [{transform_indices = @transform_0, window_bounds = array<i64: 16, 128>}, {transform_indices = @transform_1, window_bounds = array<i64: 128, 128>}, {pipeline_mode = #tpu.pipeline_mode<synchronous>, transform_indices = @transform_2, window_bounds = array<i64: 1, 128>}, {pipeline_mode = #tpu.pipeline_mode<synchronous>, transform_indices = @transform_3, window_bounds = array<i64: 128, 128>}, {pipeline_mode = #tpu.pipeline_mode<synchronous>, transform_indices = @transform_4, window_bounds = array<i64: 1, 128>}, {pipeline_mode = #tpu.pipeline_mode<synchronous>, transform_indices = @transform_5, window_bounds = array<i64: 128, 128>}, {pipeline_mode = #tpu.pipeline_mode<synchronous>, transform_indices = @transform_6, window_bounds = array<i64: 1, 128>}, {transform_indices = @transform_7, window_bounds = array<i64: 16, 128>}]} {
    %c0_i32 = arith.constant 0 : i32
    %0 = arith.cmpi eq, %arg1, %c0_i32 : i32
    %1 = arith.extui %0 : i1 to i32
    %c0_i32_0 = arith.constant 0 : i32
    %2 = arith.cmpi ne, %1, %c0_i32_0 : i32
    scf.if %2 {
      %cst_10 = arith.constant 0.000000e+00 : f32
      %13 = vector.broadcast %cst_10 : f32 to vector<16x128xf32>
      %c0_11 = arith.constant 0 : index
      %c0_12 = arith.constant 0 : index
      %14 = vector.load %arg10[%c0_11, %c0_12] : memref<16x128xf32, #tpu.memory_space<vmem>>, vector<16x128xf32>
      tpu.vector_store %arg10[%c0_11, %c0_12], %13 {strides = array<i32>} : memref<16x128xf32, #tpu.memory_space<vmem>>, vector<16x128xf32>,
    } else {
    }
    %c0 = arith.constant 0 : index
    %c0_1 = arith.constant 0 : index
    %3 = vector.load %arg2[%c0, %c0_1] : memref<16x128xf32, #tpu.memory_space<vmem>>, vector<16x128xf32>
    %4 = arith.truncf %3 : vector<16x128xf32> to vector<16x128xbf16>
    %c0_2 = arith.constant 0 : index
    %c0_3 = arith.constant 0 : index
    %5 = vector.load %arg10[%c0_2, %c0_3] : memref<16x128xf32, #tpu.memory_space<vmem>>, vector<16x128xf32>
    %c0_4 = arith.constant 0 : index
    %c0_5 = arith.constant 0 : index
    %6 = vector.load %arg3[%c0_4, %c0_5] : memref<128x128xbf16, #tpu.memory_space<vmem>>, vector<128x128xbf16>
    %cst = arith.constant dense<0.000000e+00> : vector<16x128xf32>
    %7 = tpu.matmul %4, %6, %cst {dimension_numbers = #tpu.dot_dimension_numbers<[1], [0], [0], [1], [0, 0, 1, 1], [], []>} : vector<16x128xbf16>, vector<128x128xbf16>, vector<16x128xf32> -> vector<16x128xf32>
    %8 = arith.addf %5, %7 : vector<16x128xf32>
    %c0_6 = arith.constant 0 : index
    %c0_7 = arith.constant 0 : index
    %9 = vector.load %arg10[%c0_6, %c0_7] : memref<16x128xf32, #tpu.memory_space<vmem>>, vector<16x128xf32>
    tpu.vector_store %arg10[%c0_6, %c0_7], %8 {strides = array<i32>} : memref<16x128xf32, #tpu.memory_space<vmem>>, vector<16x128xf32>,
    %c0_i32_8 = arith.constant 0 : i32
    %10 = arith.cmpi eq, %arg1, %c0_i32_8 : i32
    %11 = arith.extui %10 : i1 to i32
    %c0_i32_9 = arith.constant 0 : i32
    %12 = arith.cmpi ne, %11, %c0_i32_9 : i32
    scf.if %12 {
      %c0_10 = arith.constant 0 : index
      %c0_11 = arith.constant 0 : index
      %13 = vector.load %arg10[%c0_10, %c0_11] : memref<16x128xf32, #tpu.memory_space<vmem>>, vector<16x128xf32>
      %c0_12 = arith.constant 0 : index
      %c0_13 = arith.constant 0 : index
      %14 = vector.load %arg4[%c0_12, %c0_13] : memref<1x128xf32, #tpu.memory_space<vmem>>, vector<1x128xf32>
      %15 = vector.broadcast %14 : vector<1x128xf32> to vector<16x128xf32>
      %16 = arith.addf %13, %15 : vector<16x128xf32>
      %17 = arith.negf %16 : vector<16x128xf32>
      %18 = math.exp %17 : vector<16x128xf32>
      %cst_14 = arith.constant 1.000000e+00 : f32
      %19 = vector.broadcast %cst_14 : f32 to vector<16x128xf32>
      %20 = arith.addf %19, %18 : vector<16x128xf32>
      %21 = arith.divf %19, %20 : vector<16x128xf32>
      %22 = arith.truncf %21 : vector<16x128xf32> to vector<16x128xbf16>
      %c0_15 = arith.constant 0 : index
      %c0_16 = arith.constant 0 : index
      %23 = vector.load %arg5[%c0_15, %c0_16] : memref<128x128xbf16, #tpu.memory_space<vmem>>, vector<128x128xbf16>
      %c0_17 = arith.constant 0 : index
      %c0_18 = arith.constant 0 : index
      %24 = vector.load %arg6[%c0_17, %c0_18] : memref<1x128xf32, #tpu.memory_space<vmem>>, vector<1x128xf32>
      %cst_19 = arith.constant dense<0.000000e+00> : vector<16x128xf32>
      %25 = tpu.matmul %22, %23, %cst_19 {dimension_numbers = #tpu.dot_dimension_numbers<[1], [0], [0], [1], [0, 0, 1, 1], [], []>} : vector<16x128xbf16>, vector<128x128xbf16>, vector<16x128xf32> -> vector<16x128xf32>
      %26 = vector.broadcast %24 : vector<1x128xf32> to vector<16x128xf32>
      %27 = arith.addf %25, %26 : vector<16x128xf32>
      %28 = arith.negf %27 : vector<16x128xf32>
      %29 = math.exp %28 : vector<16x128xf32>
      %cst_20 = arith.constant 1.000000e+00 : f32
      %30 = vector.broadcast %cst_20 : f32 to vector<16x128xf32>
      %31 = arith.addf %30, %29 : vector<16x128xf32>
      %32 = arith.divf %30, %31 : vector<16x128xf32>
      %33 = arith.truncf %32 : vector<16x128xf32> to vector<16x128xbf16>
      %c0_21 = arith.constant 0 : index
      %c0_22 = arith.constant 0 : index
      %34 = vector.load %arg7[%c0_21, %c0_22] : memref<128x128xbf16, #tpu.memory_space<vmem>>, vector<128x128xbf16>
      %c0_23 = arith.constant 0 : index
      %c0_24 = arith.constant 0 : index
      %35 = vector.load %arg8[%c0_23, %c0_24] : memref<1x128xf32, #tpu.memory_space<vmem>>, vector<1x128xf32>
      %cst_25 = arith.constant dense<0.000000e+00> : vector<16x128xf32>
      %36 = tpu.matmul %33, %34, %cst_25 {dimension_numbers = #tpu.dot_dimension_numbers<[1], [0], [0], [1], [0, 0, 1, 1], [], []>} : vector<16x128xbf16>, vector<128x128xbf16>, vector<16x128xf32> -> vector<16x128xf32>
      %37 = vector.broadcast %35 : vector<1x128xf32> to vector<16x128xf32>
      %38 = arith.addf %36, %37 : vector<16x128xf32>
      %39 = tpu.iota {dimensions = array<i32: 1>} : vector<16x128xi32>
      %c8_i32 = arith.constant 8 : i32
      %40 = vector.broadcast %c8_i32 : i32 to vector<16x128xi32>
      %41 = arith.cmpi slt, %39, %40 : vector<16x128xi32>
      %cst_26 = arith.constant 0xFF800000 : f32
      %42 = vector.broadcast %cst_26 : f32 to vector<16x128xf32>
      %43 = arith.select %41, %38, %42 : vector<16x128xi1>, vector<16x128xf32>
      %cst_27 = arith.constant dense<0xFF800000> : vector<16xf32>
      %44 = vector.multi_reduction <maximumf>, %43, %cst_27 [1] : vector<16x128xf32> to vector<16xf32>
      %45 = vector.shape_cast %44 : vector<16xf32> to vector<16x1xf32>
      %46 = vector.broadcast %45 : vector<16x1xf32> to vector<16x128xf32>
      %47 = arith.subf %43, %46 : vector<16x128xf32>
      %48 = math.exp %47 : vector<16x128xf32>
      %cst_28 = arith.constant dense<0.000000e+00> : vector<16xf32>
      %49 = vector.multi_reduction <add>, %48, %cst_28 [1] : vector<16x128xf32> to vector<16xf32>
      %50 = vector.shape_cast %49 : vector<16xf32> to vector<16x1xf32>
      %51 = math.log %50 : vector<16x1xf32>
      %52 = vector.broadcast %51 : vector<16x1xf32> to vector<16x128xf32>
      %53 = arith.subf %47, %52 : vector<16x128xf32>
      %c0_29 = arith.constant 0 : index
      %c0_30 = arith.constant 0 : index
      %54 = vector.load %arg9[%c0_29, %c0_30] : memref<16x128xf32, #tpu.memory_space<vmem>>, vector<16x128xf32>
      tpu.vector_store %arg9[%c0_29, %c0_30], %53 {strides = array<i32>} : memref<16x128xf32, #tpu.memory_space<vmem>>, vector<16x128xf32>,
    } else {
    }
    return
  }
  func.func @transform_0(%arg0: i32, %arg1: i32) -> (i32, i32) {
    %c0_i32 = arith.constant 0 : i32
    return %arg0, %arg1 : i32, i32
  }
  func.func @transform_1(%arg0: i32, %arg1: i32) -> (i32, i32) {
    %c0_i32 = arith.constant 0 : i32
    %c0_i32_0 = arith.constant 0 : i32
    return %arg1, %c0_i32 : i32, i32
  }
  func.func @transform_2(%arg0: i32, %arg1: i32) -> (i32, i32) {
    %c0_i32 = arith.constant 0 : i32
    %c0_i32_0 = arith.constant 0 : i32
    %c0_i32_1 = arith.constant 0 : i32
    return %c0_i32, %c0_i32_0 : i32, i32
  }
  func.func @transform_3(%arg0: i32, %arg1: i32) -> (i32, i32) {
    %c0_i32 = arith.constant 0 : i32
    %c0_i32_0 = arith.constant 0 : i32
    %c0_i32_1 = arith.constant 0 : i32
    return %c0_i32, %c0_i32_0 : i32, i32
  }
  func.func @transform_4(%arg0: i32, %arg1: i32) -> (i32, i32) {
    %c0_i32 = arith.constant 0 : i32
    %c0_i32_0 = arith.constant 0 : i32
    %c0_i32_1 = arith.constant 0 : i32
    return %c0_i32, %c0_i32_0 : i32, i32
  }
  func.func @transform_5(%arg0: i32, %arg1: i32) -> (i32, i32) {
    %c0_i32 = arith.constant 0 : i32
    %c0_i32_0 = arith.constant 0 : i32
    %c0_i32_1 = arith.constant 0 : i32
    return %c0_i32, %c0_i32_0 : i32, i32
  }
  func.func @transform_6(%arg0: i32, %arg1: i32) -> (i32, i32) {
    %c0_i32 = arith.constant 0 : i32
    %c0_i32_0 = arith.constant 0 : i32
    %c0_i32_1 = arith.constant 0 : i32
    return %c0_i32, %c0_i32_0 : i32, i32
  }
  func.func @transform_7(%arg0: i32, %arg1: i32) -> (i32, i32) {
    %c0_i32 = arith.constant 0 : i32
    %c0_i32_0 = arith.constant 0 : i32
    return %arg0, %c0_i32 : i32, i32
  }
}

</mosaic_0001>

<bundles_post_ra>
// kernel: tpu_custom_call.1
= control target key start
LH: loop header
LB: loop body
LE: loop exit
PB: predicated region body
PF: predicated region fallthrough
CT: control target
= control target key end

     0   :  { %12 = vsyncpa [#allocation4], 0  ;;  %s918_s0 = inlined_call_operand.hbm [shape: f32[8,128], index: 0, kind: input, shape index: {}]   ;;  %s919_s1 = inlined_call_operand.hbm [shape: bf16[128,128], index: 1, kind: input, shape index: {}]   ;;  %s920_s2 = inlined_call_operand.vmem [shape: f32[1,128], index: 2, kind: input, shape index: {}]   ;;  %s921_s3 = inlined_call_operand.hbm [shape: bf16[128,128], index: 3, kind: input, shape index: {}]   ;;  %s922_s4 = inlined_call_operand.vmem [shape: f32[1,128], index: 4, kind: input, shape index: {}]   ;;  %s923_s5 = inlined_call_operand.hbm [shape: bf16[128,128], index: 5, kind: input, shape index: {}]   ;;  %s924_s6 = inlined_call_operand.vmem [shape: f32[1,128], index: 6, kind: input, shape index: {}]   ;;  %s925_s7 = inlined_call_operand.hbm [shape: f32[8,128], index: 7, kind: output, shape index: {}]  }
   0x1   :  { %13 = vsyncpa [#allocation7], 0 }
   0x2   :  { %14 = vsyncpa [#allocation10], 0 }
   0x3   :  { %15 = vsyncpa [#allocation5], 0 }
   0x4   :  { %20 = vsyncadd [#allocation4], 128  ;;  %s798_s24 = smov [#allocation6]  }
   0x5   :  { %s33_s25 = sshll.u32 %s798_s24, 4  ;;  %s34_s25 = int_to_ptr.vmem [resolvable:$true] %s33_s25 }
   0x6   :  { %s698_s26 = scalar_lea.vmem %s34_s25, 1024  ;;  %p703_p1 = scmp.lt.s32.totalorder %s34_s25, %s34_s25 }
   0x7   :  { %p699_p0 = scmp.ne.s32.totalorder %s34_s25, %s698_s26  ;;  %p704_p2 = scmp.lt.s32.totalorder %s698_s26, %s698_s26 }
   0x9   :  { %p705_p3 = por %p704_p2, %p703_p1 }
   0xb   :  { %p706_p4 = pnand %p705_p3, %p699_p0 }
   0xd   :  { %709 = shalt.err (!%p706_p4)
}
   0xe   :  { %s799_s27 = smov 64   ;;  %s800_s28 = smov 4  }
   0xf   :  { %39 = dma.hbm_to_vmem [thread:$0]  %s919_s1, 1024, %s34_s25, [#allocation7], %s799_s27, %s799_s27, %s800_s28  }
  0x10   :  { %s801_s8 = smov [#allocation3]  }
  0x11   :  { %s21_s9 = sshll.u32 %s801_s8, 4  ;;  %s22_s9 = int_to_ptr.vmem [resolvable:$true] %s21_s9 }
  0x12   :  { %s718_s10 = scalar_lea.vmem %s22_s9, 128  ;;  %s722_s11 = scalar_lea.vmem %s22_s9, 256 }
  0x13   :  { %p719_p5 = scmp.ne.s32.totalorder %s22_s9, %s718_s10  ;;  %p723_p6 = scmp.lt.s32.totalorder %s22_s9, %s22_s9 }
  0x14   :  { %p724_p7 = scmp.lt.s32.totalorder %s722_s11, %s718_s10 }
  0x16   :  { %p725_p8 = por %p724_p7, %p723_p6 }
  0x18   :  { %p726_p9 = pnand %p725_p8, %p719_p5 }
  0x1a   :  { %729 = shalt.err (!%p726_p9)
}
  0x1b   :  { %s802_s12 = smov 128   ;;  %s803_s13 = smov 8  }
  0x1c   :  { %27 = dma.hbm_to_vmem [thread:$0]  %s918_s0, 128, %s22_s9, [#allocation4], %s802_s12, %s802_s12, %s803_s13  }
  0x1d   :  { %s804_s1 = smov [#allocation8]   ;;  %s805_s17 = smov [#allocation9]  }
  0x1e   :  { %s47_s16 = sshll.u32 %s804_s1, 4  ;;  %s61_s18 = sshll.u32 %s805_s17, 4  ;;  %s48_s16 = int_to_ptr.vmem [resolvable:$true] %s47_s16  ;;  %s62_s18 = int_to_ptr.vmem [resolvable:$true] %s61_s18 }
  0x1f   :  { %s738_s19 = scalar_lea.vmem %s48_s16, 1024  ;;  %p743_p11 = scmp.lt.s32.totalorder %s48_s16, %s48_s16 }
  0x20   :  { %p739_p10 = scmp.ne.s32.totalorder %s48_s16, %s738_s19  ;;  %p744_p12 = scmp.lt.s32.totalorder %s738_s19, %s738_s19 }
  0x22   :  { %p745_p13 = por %p744_p12, %p743_p11 }
  0x24   :  { %p746_p0 = pnand %p745_p13, %p739_p10 }
  0x26   :  { %749 = shalt.err (!%p746_p0)
}
  0x27   :  { %53 = dma.hbm_to_vmem [thread:$0]  %s921_s3, 1024, %s48_s16, [#allocation7], %s799_s27, %s799_s27, %s800_s28  }
  0x28   :  { %s758_s0 = scalar_lea.vmem %s62_s18, 1024  ;;  %p763_p2 = scmp.lt.s32.totalorder %s62_s18, %s62_s18 }
  0x29   :  { %p759_p1 = scmp.ne.s32.totalorder %s62_s18, %s758_s0  ;;  %p764_p3 = scmp.lt.s32.totalorder %s758_s0, %s758_s0 }
  0x2b   :  { %p765_p4 = por %p764_p3, %p763_p2 }
  0x2d   :  { %p766_p5 = pnand %p765_p4, %p759_p1 }
  0x2f   :  { %769 = shalt.err (!%p766_p5)
}
  0x30   :  { %67 = dma.hbm_to_vmem [thread:$0]  %s923_s5, 1024, %s62_s18, [#allocation10], %s799_s27, %s799_s27, %s800_s28  }
  0x31   :  { %790 = dma.done.wait [#allocation4], 256  }
  0x32   :  { %791 = vsyncadd [#allocation4], 4294967040 }
  0x33   :  { %792 = dma.done.wait [#allocation7], 2048  }
  0x34   :  { %793 = vsyncadd [#allocation7], 4294965248 }
  0x35   :  { %794 = dma.done.wait [#allocation10], 1024  }
  0x36   :  { %795 = vsyncadd [#allocation10], 4294966272  ;;  %v806_v0 = vmov 0.0   ;;  %vm807_vm0 = vmmov 0   ;;  %v642_v1 = vld [vmem:[#allocation6 + $0x38] sm:$0xff]   ;;  %v643_v2 = vld [vmem:[#allocation6 + $0x30] sm:$0xff]   ;;  %v467_v60 = vlaneseq }
  0x37   :  { %571 = vmatprep.subr.bf16.mxu0 %v806_v0  ;;  %587 = vmatprep.mubr.msk.bf16.mxu0 %vm807_vm0, %v806_v0  ;;  %v644_v3 = vld [vmem:[#allocation6 + $0x28] sm:$0xff]   ;;  %v645_v4 = vld [vmem:[#allocation6 + $0x20] sm:$0xff]   ;;  %v646_v5 = vld [vmem:[#allocation6 + $0x18] sm:$0xff]  }
  0x38   :  { %591 = vmatprep.subr.bf16.mxu1 %v806_v0  ;;  %607 = vmatprep.mubr.msk.bf16.mxu1 %vm807_vm0, %v806_v0  ;;  %v647_v6 = vld [vmem:[#allocation6 + $0x10] sm:$0xff]   ;;  %v648_v7 = vld [vmem:[#allocation6 + $0x8] sm:$0xff]   ;;  %v649_v8 = vld [vmem:[#allocation6] sm:$0xff]   ;;  %v468_v61 = vand.u32 127, %v467_v60 }
  0x39   :  { %572 = vmatpush3.bf16.msra.mxu0 %v642_v1  ;;  %v89_v9 = vld [vmem:[#allocation3] sm:$0xff]  ;;  %v90_v10 = vld [vmem:[#allocation3 + $0x8] sm:$0xff]  ;;  %v652_v14 = vld [vmem:[#allocation8 + $0x28] sm:$0xff]  }
  0x3a   :  { %573 = vmatprep.subr.bf16.mxu0 %v806_v0  ;;  %v91_v11 = vpack.c.bf16 %v90_v10, %v89_v9  ;;  %v650_v12 = vld [vmem:[#allocation8 + $0x38] sm:$0xff]   ;;  %v651_v13 = vld [vmem:[#allocation8 + $0x30] sm:$0xff]   ;;  %v653_v15 = vld [vmem:[#allocation8 + $0x20] sm:$0xff]   ;;  %vm469_vm1 = vcmp.lt.s32.totalorder %v468_v61, 8 }
  0x3b   :  { %592 = vmatpush3.bf16.msra.mxu1 %v650_v12  ;;  %v654_v16 = vld [vmem:[#allocation8 + $0x18] sm:$0xff]   ;;  %v655_v17 = vld [vmem:[#allocation8 + $0x10] sm:$0xff]   ;;  %v656_v18 = vld [vmem:[#allocation8 + $0x8] sm:$0xff]  }
  0x3c   :  { %593 = vmatprep.subr.bf16.mxu1 %v806_v0  ;;  %v657_v19 = vld [vmem:[#allocation8] sm:$0xff]   ;;  %v521_v20 = vld [vmem:[%s920_s2] ss:$0 sm:$0xff]  ;;  %v658_v36 = vld [vmem:[#allocation9 + $0x38] sm:$0xff]  }
  0x3d   :  { %574 = vmatpush3.bf16.msra.mxu0 %v643_v2  ;;  %v659_v37 = vld [vmem:[#allocation9 + $0x30] sm:$0xff]   ;;  %v660_v38 = vld [vmem:[#allocation9 + $0x28] sm:$0xff]   ;;  %v661_v39 = vld [vmem:[#allocation9 + $0x20] sm:$0xff]  }
  0x3e   :  { %575 = vmatprep.subr.bf16.mxu0 %v806_v0  ;;  %v662_v40 = vld [vmem:[#allocation9 + $0x18] sm:$0xff]   ;;  %v663_v41 = vld [vmem:[#allocation9 + $0x10] sm:$0xff]   ;;  %v664_v42 = vld [vmem:[#allocation9 + $0x8] sm:$0xff]  }
  0x3f   :  { %594 = vmatpush3.bf16.msra.mxu1 %v651_v13  ;;  %v665_v43 = vld [vmem:[#allocation9] sm:$0xff]   ;;  %v524_v44 = vld [vmem:[%s922_s4] ss:$0 sm:$0xff] }
  0x40   :  { %595 = vmatprep.subr.bf16.mxu1 %v806_v0  ;;  %v535_v62 = vld [vmem:[%s924_s6] ss:$0 sm:$0xff] }
  0x41   :  { %576 = vmatpush3.bf16.msra.mxu0 %v644_v3 }
  0x42   :  { %577 = vmatprep.subr.bf16.mxu0 %v806_v0 }
  0x43   :  { %596 = vmatpush3.bf16.msra.mxu1 %v652_v14 }
  0x44   :  { %597 = vmatprep.subr.bf16.mxu1 %v806_v0 }
  0x45   :  { %578 = vmatpush3.bf16.msra.mxu0 %v645_v4 }
  0x46   :  { %579 = vmatprep.subr.bf16.mxu0 %v806_v0 }
  0x47   :  { %598 = vmatpush3.bf16.msra.mxu1 %v653_v15 }
  0x48   :  { %599 = vmatprep.subr.bf16.mxu1 %v806_v0 }
  0x49   :  { %580 = vmatpush3.bf16.msra.mxu0 %v646_v5 }
  0x4a   :  { %581 = vmatprep.subr.bf16.mxu0 %v806_v0 }
  0x4b   :  { %600 = vmatpush3.bf16.msra.mxu1 %v654_v16 }
  0x4c   :  { %601 = vmatprep.subr.bf16.mxu1 %v806_v0 }
  0x4d   :  { %582 = vmatpush3.bf16.msra.mxu0 %v647_v6 }
  0x4e   :  { %583 = vmatprep.subr.bf16.mxu0 %v806_v0 }
  0x4f   :  { %602 = vmatpush3.bf16.msra.mxu1 %v655_v17 }
  0x50   :  { %603 = vmatprep.subr.bf16.mxu1 %v806_v0 }
  0x51   :  { %584 = vmatpush3.bf16.msra.mxu0 %v648_v7 }
  0x52   :  { %585 = vmatprep.subr.bf16.mxu0 %v806_v0 }
  0x53   :  { %604 = vmatpush3.bf16.msra.mxu1 %v656_v18 }
  0x54   :  { %605 = vmatprep.subr.bf16.mxu1 %v806_v0 }
  0x55   :  { %586 = vmatpush3.bf16.msra.mxu0 %v649_v8 }
  0x56   :  { %611 = vmatprep.subr.bf16.mxu0 %v806_v0 }
  0x57   :  { %606 = vmatpush3.bf16.msra.mxu1 %v657_v19 }
  0x58   :  { %588 = vmatmul.mubr.bf16.vlgmr.msra.gmra.mxu0 %v91_v11 }
  0x59   :  { %627 = vmatprep.mubr.msk.bf16.mxu0 %vm807_vm0, %v806_v0  ;;  %612 = vmatpush3.bf16.msra.mxu0 %v658_v36 }
  0x5a   :  { %613 = vmatprep.subr.bf16.mxu0 %v806_v0 }
  0x5d   :  { %614 = vmatpush3.bf16.msra.mxu0 %v659_v37 }
  0x5e   :  { %615 = vmatprep.subr.bf16.mxu0 %v806_v0 }
  0x61   :  { %616 = vmatpush3.bf16.msra.mxu0 %v660_v38 }
  0x62   :  { %617 = vmatprep.subr.bf16.mxu0 %v806_v0 }
  0x65   :  { %618 = vmatpush3.bf16.msra.mxu0 %v661_v39 }
  0x66   :  { %619 = vmatprep.subr.bf16.mxu0 %v806_v0 }
  0x69   :  { %620 = vmatpush3.bf16.msra.mxu0 %v662_v40 }
  0x6a   :  { %621 = vmatprep.subr.bf16.mxu0 %v806_v0 }
  0x6d   :  { %622 = vmatpush3.bf16.msra.mxu0 %v663_v41 }
  0x6e   :  { %623 = vmatprep.subr.bf16.mxu0 %v806_v0 }
  0x71   :  { %624 = vmatpush3.bf16.msra.mxu0 %v664_v42 }
  0x72   :  { %625 = vmatprep.subr.bf16.mxu0 %v806_v0 }
  0x75   :  { %626 = vmatpush3.bf16.msra.mxu0 %v665_v43 }
 0x118   :  { %v192_v21 = vpop.f32.mrf.mxu0 }
 0x119   :  { %v215_v22 = vadd.f32 %v521_v20, %v192_v21 }
 0x11a   :  { %v589_v23 = vpop.f32.mrf.mxu0 }
 0x11b   :  { %v522_v24 = vmul.f32 -1.442695, %v215_v22 }
 0x11c   :  { %v195_v25 = vpop.f32.mrf.mxu0 }
 0x11d   :  { %666 = vpow2.f32 %v522_v24  ;;  %v216_v26 = vadd.f32 %v521_v20, %v195_v25 }
 0x11e   :  { %v590_v27 = vpop.f32.mrf.mxu0 }
 0x11f   :  { %v523_v28 = vmul.f32 -1.442695, %v216_v26 }
 0x121   :  { %668 = vpow2.f32 %v523_v28 }
 0x12a   :  { %v667_v29 = vpop.eup %666 }
 0x12b   :  { %v223_v30 = vadd.f32 1.0, %v667_v29 }
 0x12d   :  { %670 = vrcp.f32 %v223_v30 }
 0x12e   :  { %v669_v31 = vpop.eup %668 }
 0x12f   :  { %v224_v32 = vadd.f32 1.0, %v669_v31 }
 0x131   :  { %672 = vrcp.f32 %v224_v32 }
 0x13a   :  { %v671_v33 = vpop.eup %670 }
 0x13e   :  { %v673_v34 = vpop.eup %672 }
 0x13f   :  { %v229_v35 = vpack.c.bf16 %v673_v34, %v671_v33 }
 0x141   :  { %608 = vmatmul.mubr.bf16.vlgmr.msra.gmra.mxu1 %v229_v35 }
 0x201   :  { %v335_v45 = vpop.f32.mrf.mxu1 }
 0x202   :  { %v336_v46 = vadd.f32 %v524_v44, %v335_v45 }
 0x203   :  { %v609_v47 = vpop.f32.mrf.mxu1 }
 0x204   :  { %v533_v48 = vmul.f32 -1.442695, %v336_v46 }
 0x205   :  { %v338_v49 = vpop.f32.mrf.mxu1 }
 0x206   :  { %674 = vpow2.f32 %v533_v48  ;;  %v339_v50 = vadd.f32 %v524_v44, %v338_v49 }
 0x207   :  { %v610_v51 = vpop.f32.mrf.mxu1 }
 0x208   :  { %v534_v52 = vmul.f32 -1.442695, %v339_v50 }
 0x20a   :  { %676 = vpow2.f32 %v534_v52 }
 0x213   :  { %v675_v53 = vpop.eup %674 }
 0x214   :  { %v348_v54 = vadd.f32 1.0, %v675_v53 }
 0x216   :  { %678 = vrcp.f32 %v348_v54 }
 0x217   :  { %v677_v55 = vpop.eup %676 }
 0x218   :  { %v349_v56 = vadd.f32 1.0, %v677_v55 }
 0x21a   :  { %680 = vrcp.f32 %v349_v56 }
 0x223   :  { %v679_v57 = vpop.eup %678 }
 0x227   :  { %v681_v58 = vpop.eup %680 }
 0x228   :  { %v354_v59 = vpack.c.bf16 %v681_v58, %v679_v57 }
 0x22a   :  { %628 = vmatmul.mubr.bf16.vlgmr.msra.gmra.mxu0 %v354_v59 }
 0x2ea   :  { %v460_v63 = vpop.f32.mrf.mxu0 }
 0x2eb   :  { %v461_v0 = vadd.f32 %v535_v62, %v460_v63 }
 0x2ec   :  { %v629_v1 = vpop.f32.mrf.mxu0 }
 0x2ed   :  { %v470_v2 = vsel %vm469_vm1, %v461_v0, -inf }
 0x2ee   :  { %472 = vmax.xlane.f32.xlu0 %v470_v2  ;;  %v463_v3 = vpop.f32.mrf.mxu0 }
 0x2ef   :  { %v464_v4 = vadd.f32 %v535_v62, %v463_v3 }
 0x2f0   :  { %v630_v5 = vpop.f32.mrf.mxu0 }
 0x2f1   :  { %v471_v6 = vsel %vm469_vm1, %v464_v4, -inf }
 0x2f2   :  { %474 = vmax.xlane.f32.xlu0 %v471_v6 }
 0x377   :  { %v473_v7 = vpop.xlane.xlu0 %472 }
 0x378   :  { %v476_v8 = vsub.f32 %v470_v2, %v473_v7 }
 0x37a   :  { %v478_v9 = vmul.f32 1.442695, %v476_v8 }
 0x37b   :  { %v475_v10 = vpop.xlane.xlu0 %474 }
 0x37c   :  { %v477_v11 = vsub.f32 %v471_v6, %v475_v10  ;;  %682 = vpow2.f32 %v478_v9 }
 0x37e   :  { %v480_v12 = vmul.f32 1.442695, %v477_v11 }
 0x380   :  { %684 = vpow2.f32 %v480_v12 }
 0x389   :  { %v683_v13 = vpop.eup %682 }
 0x38a   :  { %482 = vadd.xlane.f32.xlu1 %v683_v13 }
 0x38d   :  { %v685_v14 = vpop.eup %684 }
 0x38e   :  { %484 = vadd.xlane.f32.xlu1 %v685_v14 }
 0x413   :  { %v483_v15 = vpop.xlane.xlu1 %482 }
 0x414   :  { %686 = vlog2.f32 %v483_v15 }
 0x417   :  { %v485_v16 = vpop.xlane.xlu1 %484 }
 0x418   :  { %688 = vlog2.f32 %v485_v16 }
 0x421   :  { %v687_v17 = vpop.eup %686 }
 0x422   :  { %v487_v18 = vmul.f32 0.6931472, %v687_v17 }
 0x424   :  { %v490_v19 = vsub.f32 %v476_v8, %v487_v18 }
 0x425   :  { %v689_v20 = vpop.eup %688 }
 0x426   :  { %492 = vst [vmem:[#allocation11] sm:$0xff] %v490_v19  ;;  %v489_v21 = vmul.f32 0.6931472, %v689_v20 }
 0x428   :  { %v491_v22 = vsub.f32 %v477_v11, %v489_v21 }
 0x42a   :  { %493 = vst [vmem:[#allocation11 + $0x8] sm:$0xff] %v491_v22 }
 0x42b   :  { %498 = vsyncadd [#allocation5], 128  ;;  %s808_s6 = smov [#allocation11]  }
 0x42c   :  { %s499_s26 = sshll.u32 %s808_s6, 4  ;;  %s500_s26 = int_to_ptr.vmem [resolvable:$true] %s499_s26 }
 0x42d   :  { %s770_s27 = scalar_lea.vmem %s500_s26, 128  ;;  %s774_s28 = scalar_lea.vmem %s500_s26, 256 }
 0x42e   :  { %p771_p6 = scmp.ne.s32.totalorder %s500_s26, %s770_s27  ;;  %p775_p7 = scmp.lt.s32.totalorder %s500_s26, %s500_s26 }
 0x42f   :  { %p776_p8 = scmp.lt.s32.totalorder %s774_s28, %s770_s27 }
 0x431   :  { %p777_p9 = por %p776_p8, %p775_p7 }
 0x433   :  { %p778_p10 = pnand %p777_p9, %p771_p6 }
 0x435   :  { %781 = shalt.err (!%p778_p10)
}
 0x436   :  { %505 = dma.vmem_to_hbm [thread:$0]  %s500_s26, 128, %s925_s7, [#allocation5], %s802_s12, %s802_s12, %s803_s13  }
 0x437   :  { %796 = dma.done.wait [#allocation5], 256  }
 0x438   :  { %797 = vsyncadd [#allocation5], 4294967040 }
 0x439   :  { %509 = vsyncpa [#allocation4], 1 }
 0x43a   :  { %510 = vsyncpa [#allocation7], 1 }
 0x43b   :  { %511 = vsyncpa [#allocation10], 1 }
 0x43c   :  { %512 = vsyncpa [#allocation5], 1 }

// kernel: tpu_custom_call.1
= control target key start
LH: loop header
LB: loop body
LE: loop exit
PB: predicated region body
PF: predicated region fallthrough
CT: control target
= control target key end

     0   :  { %12 = vsyncpa [#allocation4], 0  ;;  %s918_s0 = inlined_call_operand.hbm [shape: f32[8,128], index: 0, kind: input, shape index: {}]   ;;  %s919_s1 = inlined_call_operand.hbm [shape: bf16[128,128], index: 1, kind: input, shape index: {}]   ;;  %s920_s2 = inlined_call_operand.vmem [shape: f32[1,128], index: 2, kind: input, shape index: {}]   ;;  %s921_s3 = inlined_call_operand.hbm [shape: bf16[128,128], index: 3, kind: input, shape index: {}]   ;;  %s922_s4 = inlined_call_operand.vmem [shape: f32[1,128], index: 4, kind: input, shape index: {}]   ;;  %s923_s5 = inlined_call_operand.hbm [shape: bf16[128,128], index: 5, kind: input, shape index: {}]   ;;  %s924_s6 = inlined_call_operand.vmem [shape: f32[1,128], index: 6, kind: input, shape index: {}]   ;;  %s925_s7 = inlined_call_operand.hbm [shape: f32[8,128], index: 7, kind: output, shape index: {}]  }
   0x1   :  { %13 = vsyncpa [#allocation7], 0 }
   0x2   :  { %14 = vsyncpa [#allocation10], 0 }
   0x3   :  { %15 = vsyncpa [#allocation5], 0 }
   0x4   :  { %20 = vsyncadd [#allocation4], 128  ;;  %s798_s24 = smov [#allocation6]  }
   0x5   :  { %s33_s25 = sshll.u32 %s798_s24, 4  ;;  %s34_s25 = int_to_ptr.vmem [resolvable:$true] %s33_s25 }
   0x6   :  { %s698_s26 = scalar_lea.vmem %s34_s25, 1024  ;;  %p703_p1 = scmp.lt.s32.totalorder %s34_s25, %s34_s25 }
   0x7   :  { %p699_p0 = scmp.ne.s32.totalorder %s34_s25, %s698_s26  ;;  %p704_p2 = scmp.lt.s32.totalorder %s698_s26, %s698_s26 }
   0x9   :  { %p705_p3 = por %p704_p2, %p703_p1 }
   0xb   :  { %p706_p4 = pnand %p705_p3, %p699_p0 }
   0xd   :  { %709 = shalt.err (!%p706_p4)
}
   0xe   :  { %s799_s27 = smov 64   ;;  %s800_s28 = smov 4  }
   0xf   :  { %39 = dma.hbm_to_vmem [thread:$0]  %s919_s1, 1024, %s34_s25, [#allocation7], %s799_s27, %s799_s27, %s800_s28  }
  0x10   :  { %s801_s8 = smov [#allocation3]  }
  0x11   :  { %s21_s9 = sshll.u32 %s801_s8, 4  ;;  %s22_s9 = int_to_ptr.vmem [resolvable:$true] %s21_s9 }
  0x12   :  { %s718_s10 = scalar_lea.vmem %s22_s9, 128  ;;  %s722_s11 = scalar_lea.vmem %s22_s9, 256 }
  0x13   :  { %p719_p5 = scmp.ne.s32.totalorder %s22_s9, %s718_s10  ;;  %p723_p6 = scmp.lt.s32.totalorder %s22_s9, %s22_s9 }
  0x14   :  { %p724_p7 = scmp.lt.s32.totalorder %s722_s11, %s718_s10 }
  0x16   :  { %p725_p8 = por %p724_p7, %p723_p6 }
  0x18   :  { %p726_p9 = pnand %p725_p8, %p719_p5 }
  0x1a   :  { %729 = shalt.err (!%p726_p9)
}
  0x1b   :  { %s802_s12 = smov 128   ;;  %s803_s13 = smov 8  }
  0x1c   :  { %27 = dma.hbm_to_vmem [thread:$0]  %s918_s0, 128, %s22_s9, [#allocation4], %s802_s12, %s802_s12, %s803_s13  }
  0x1d   :  { %s804_s1 = smov [#allocation8]   ;;  %s805_s17 = smov [#allocation9]  }
  0x1e   :  { %s47_s16 = sshll.u32 %s804_s1, 4  ;;  %s61_s18 = sshll.u32 %s805_s17, 4  ;;  %s48_s16 = int_to_ptr.vmem [resolvable:$true] %s47_s16  ;;  %s62_s18 = int_to_ptr.vmem [resolvable:$true] %s61_s18 }
  0x1f   :  { %s738_s19 = scalar_lea.vmem %s48_s16, 1024  ;;  %p743_p11 = scmp.lt.s32.totalorder %s48_s16, %s48_s16 }
  0x20   :  { %p739_p10 = scmp.ne.s32.totalorder %s48_s16, %s738_s19  ;;  %p744_p12 = scmp.lt.s32.totalorder %s738_s19, %s738_s19 }
  0x22   :  { %p745_p13 = por %p744_p12, %p743_p11 }
  0x24   :  { %p746_p0 = pnand %p745_p13, %p739_p10 }
  0x26   :  { %749 = shalt.err (!%p746_p0)
}
  0x27   :  { %53 = dma.hbm_to_vmem [thread:$0]  %s921_s3, 1024, %s48_s16, [#allocation7], %s799_s27, %s799_s27, %s800_s28  }
  0x28   :  { %s758_s0 = scalar_lea.vmem %s62_s18, 1024  ;;  %p763_p2 = scmp.lt.s32.totalorder %s62_s18, %s62_s18 }
  0x29   :  { %p759_p1 = scmp.ne.s32.totalorder %s62_s18, %s758_s0  ;;  %p764_p3 = scmp.lt.s32.totalorder %s758_s0, %s758_s0 }
  0x2b   :  { %p765_p4 = por %p764_p3, %p763_p2 }
  0x2d   :  { %p766_p5 = pnand %p765_p4, %p759_p1 }
  0x2f   :  { %769 = shalt.err (!%p766_p5)
}
  0x30   :  { %67 = dma.hbm_to_vmem [thread:$0]  %s923_s5, 1024, %s62_s18, [#allocation10], %s799_s27, %s799_s27, %s800_s28  }
  0x31   :  { %790 = dma.done.wait [#allocation4], 256  }
  0x32   :  { %791 = vsyncadd [#allocation4], 4294967040 }
  0x33   :  { %792 = dma.done.wait [#allocation7], 2048  }
  0x34   :  { %793 = vsyncadd [#allocation7], 4294965248 }
  0x35   :  { %794 = dma.done.wait [#allocation10], 1024  }
  0x36   :  { %795 = vsyncadd [#allocation10], 4294966272  ;;  %v806_v0 = vmov 0.0   ;;  %vm807_vm0 = vmmov 0   ;;  %v642_v1 = vld [vmem:[#allocation6 + $0x38] sm:$0xff]   ;;  %v643_v2 = vld [vmem:[#allocation6 + $0x30] sm:$0xff]   ;;  %v467_v60 = vlaneseq }
  0x37   :  { %571 = vmatprep.subr.bf16.mxu0 %v806_v0  ;;  %587 = vmatprep.mubr.msk.bf16.mxu0 %vm807_vm0, %v806_v0  ;;  %v644_v3 = vld [vmem:[#allocation6 + $0x28] sm:$0xff]   ;;  %v645_v4 = vld [vmem:[#allocation6 + $0x20] sm:$0xff]   ;;  %v646_v5 = vld [vmem:[#allocation6 + $0x18] sm:$0xff]  }
  0x38   :  { %591 = vmatprep.subr.bf16.mxu1 %v806_v0  ;;  %607 = vmatprep.mubr.msk.bf16.mxu1 %vm807_vm0, %v806_v0  ;;  %v647_v6 = vld [vmem:[#allocation6 + $0x10] sm:$0xff]   ;;  %v648_v7 = vld [vmem:[#allocation6 + $0x8] sm:$0xff]   ;;  %v649_v8 = vld [vmem:[#allocation6] sm:$0xff]   ;;  %v468_v61 = vand.u32 127, %v467_v60 }
  0x39   :  { %572 = vmatpush3.bf16.msra.mxu0 %v642_v1  ;;  %v89_v9 = vld [vmem:[#allocation3] sm:$0xff]  ;;  %v90_v10 = vld [vmem:[#allocation3 + $0x8] sm:$0xff]  ;;  %v652_v14 = vld [vmem:[#allocation8 + $0x28] sm:$0xff]  }
  0x3a   :  { %573 = vmatprep.subr.bf16.mxu0 %v806_v0  ;;  %v91_v11 = vpack.c.bf16 %v90_v10, %v89_v9  ;;  %v650_v12 = vld [vmem:[#allocation8 + $0x38] sm:$0xff]   ;;  %v651_v13 = vld [vmem:[#allocation8 + $0x30] sm:$0xff]   ;;  %v653_v15 = vld [vmem:[#allocation8 + $0x20] sm:$0xff]   ;;  %vm469_vm1 = vcmp.lt.s32.totalorder %v468_v61, 8 }
  0x3b   :  { %592 = vmatpush3.bf16.msra.mxu1 %v650_v12  ;;  %v654_v16 = vld [vmem:[#allocation8 + $0x18] sm:$0xff]   ;;  %v655_v17 = vld [vmem:[#allocation8 + $0x10] sm:$0xff]   ;;  %v656_v18 = vld [vmem:[#allocation8 + $0x8] sm:$0xff]  }
  0x3c   :  { %593 = vmatprep.subr.bf16.mxu1 %v806_v0  ;;  %v657_v19 = vld [vmem:[#allocation8] sm:$0xff]   ;;  %v521_v20 = vld [vmem:[%s920_s2] ss:$0 sm:$0xff]  ;;  %v658_v36 = vld [vmem:[#allocation9 + $0x38] sm:$0xff]  }
  0x3d   :  { %574 = vmatpush3.bf16.msra.mxu0 %v643_v2  ;;  %v659_v37 = vld [vmem:[#allocation9 + $0x30] sm:$0xff]   ;;  %v660_v38 = vld [vmem:[#allocation9 + $0x28] sm:$0xff]   ;;  %v661_v39 = vld [vmem:[#allocation9 + $0x20] sm:$0xff]  }
  0x3e   :  { %575 = vmatprep.subr.bf16.mxu0 %v806_v0  ;;  %v662_v40 = vld [vmem:[#allocation9 + $0x18] sm:$0xff]   ;;  %v663_v41 = vld [vmem:[#allocation9 + $0x10] sm:$0xff]   ;;  %v664_v42 = vld [vmem:[#allocation9 + $0x8] sm:$0xff]  }
  0x3f   :  { %594 = vmatpush3.bf16.msra.mxu1 %v651_v13  ;;  %v665_v43 = vld [vmem:[#allocation9] sm:$0xff]   ;;  %v524_v44 = vld [vmem:[%s922_s4] ss:$0 sm:$0xff] }
  0x40   :  { %595 = vmatprep.subr.bf16.mxu1 %v806_v0  ;;  %v535_v62 = vld [vmem:[%s924_s6] ss:$0 sm:$0xff] }
  0x41   :  { %576 = vmatpush3.bf16.msra.mxu0 %v644_v3 }
  0x42   :  { %577 = vmatprep.subr.bf16.mxu0 %v806_v0 }
  0x43   :  { %596 = vmatpush3.bf16.msra.mxu1 %v652_v14 }
  0x44   :  { %597 = vmatprep.subr.bf16.mxu1 %v806_v0 }
  0x45   :  { %578 = vmatpush3.bf16.msra.mxu0 %v645_v4 }
  0x46   :  { %579 = vmatprep.subr.bf16.mxu0 %v806_v0 }
  0x47   :  { %598 = vmatpush3.bf16.msra.mxu1 %v653_v15 }
  0x48   :  { %599 = vmatprep.subr.bf16.mxu1 %v806_v0 }
  0x49   :  { %580 = vmatpush3.bf16.msra.mxu0 %v646_v5 }
  0x4a   :  { %581 = vmatprep.subr.bf16.mxu0 %v806_v0 }
  0x4b   :  { %600 = vmatpush3.bf16.msra.mxu1 %v654_v16 }
  0x4c   :  { %601 = vmatprep.subr.bf16.mxu1 %v806_v0 }
  0x4d   :  { %582 = vmatpush3.bf16.msra.mxu0 %v647_v6 }
  0x4e   :  { %583 = vmatprep.subr.bf16.mxu0 %v806_v0 }
  0x4f   :  { %602 = vmatpush3.bf16.msra.mxu1 %v655_v17 }
  0x50   :  { %603 = vmatprep.subr.bf16.mxu1 %v806_v0 }
  0x51   :  { %584 = vmatpush3.bf16.msra.mxu0 %v648_v7 }
  0x52   :  { %585 = vmatprep.subr.bf16.mxu0 %v806_v0 }
  0x53   :  { %604 = vmatpush3.bf16.msra.mxu1 %v656_v18 }
  0x54   :  { %605 = vmatprep.subr.bf16.mxu1 %v806_v0 }
  0x55   :  { %586 = vmatpush3.bf16.msra.mxu0 %v649_v8 }
  0x56   :  { %611 = vmatprep.subr.bf16.mxu0 %v806_v0 }
  0x57   :  { %606 = vmatpush3.bf16.msra.mxu1 %v657_v19 }
  0x58   :  { %588 = vmatmul.mubr.bf16.vlgmr.msra.gmra.mxu0 %v91_v11 }
  0x59   :  { %627 = vmatprep.mubr.msk.bf16.mxu0 %vm807_vm0, %v806_v0  ;;  %612 = vmatpush3.bf16.msra.mxu0 %v658_v36 }
  0x5a   :  { %613 = vmatprep.subr.bf16.mxu0 %v806_v0 }
  0x5d   :  { %614 = vmatpush3.bf16.msra.mxu0 %v659_v37 }
  0x5e   :  { %615 = vmatprep.subr.bf16.mxu0 %v806_v0 }
  0x61   :  { %616 = vmatpush3.bf16.msra.mxu0 %v660_v38 }
  0x62   :  { %617 = vmatprep.subr.bf16.mxu0 %v806_v0 }
  0x65   :  { %618 = vmatpush3.bf16.msra.mxu0 %v661_v39 }
  0x66   :  { %619 = vmatprep.subr.bf16.mxu0 %v806_v0 }
  0x69   :  { %620 = vmatpush3.bf16.msra.mxu0 %v662_v40 }
  0x6a   :  { %621 = vmatprep.subr.bf16.mxu0 %v806_v0 }
  0x6d   :  { %622 = vmatpush3.bf16.msra.mxu0 %v663_v41 }
  0x6e   :  { %623 = vmatprep.subr.bf16.mxu0 %v806_v0 }
  0x71   :  { %624 = vmatpush3.bf16.msra.mxu0 %v664_v42 }
  0x72   :  { %625 = vmatprep.subr.bf16.mxu0 %v806_v0 }
  0x75   :  { %626 = vmatpush3.bf16.msra.mxu0 %v665_v43 }
 0x118   :  { %v192_v21 = vpop.f32.mrf.mxu0 }
 0x119   :  { %v215_v22 = vadd.f32 %v521_v20, %v192_v21 }
 0x11a   :  { %v589_v23 = vpop.f32.mrf.mxu0 }
 0x11b   :  { %v522_v24 = vmul.f32 -1.442695, %v215_v22 }
 0x11c   :  { %v195_v25 = vpop.f32.mrf.mxu0 }
 0x11d   :  { %666 = vpow2.f32 %v522_v24  ;;  %v216_v26 = vadd.f32 %v521_v20, %v195_v25 }
 0x11e   :  { %v590_v27 = vpop.f32.mrf.mxu0 }
 0x11f   :  { %v523_v28 = vmul.f32 -1.442695, %v216_v26 }
 0x121   :  { %668 = vpow2.f32 %v523_v28 }
 0x12a   :  { %v667_v29 = vpop.eup %666 }
 0x12b   :  { %v223_v30 = vadd.f32 1.0, %v667_v29 }
 0x12d   :  { %670 = vrcp.f32 %v223_v30 }
 0x12e   :  { %v669_v31 = vpop.eup %668 }
 0x12f   :  { %v224_v32 = vadd.f32 1.0, %v669_v31 }
 0x131   :  { %672 = vrcp.f32 %v224_v32 }
 0x13a   :  { %v671_v33 = vpop.eup %670 }
 0x13e   :  { %v673_v34 = vpop.eup %672 }
 0x13f   :  { %v229_v35 = vpack.c.bf16 %v673_v34, %v671_v33 }
 0x141   :  { %608 = vmatmul.mubr.bf16.vlgmr.msra.gmra.mxu1 %v229_v35 }
 0x201   :  { %v335_v45 = vpop.f32.mrf.mxu1 }
 0x202   :  { %v336_v46 = vadd.f32 %v524_v44, %v335_v45 }
 0x203   :  { %v609_v47 = vpop.f32.mrf.mxu1 }
 0x204   :  { %v533_v48 = vmul.f32 -1.442695, %v336_v46 }
 0x205   :  { %v338_v49 = vpop.f32.mrf.mxu1 }
 0x206   :  { %674 = vpow2.f32 %v533_v48  ;;  %v339_v50 = vadd.f32 %v524_v44, %v338_v49 }
 0x207   :  { %v610_v51 = vpop.f32.mrf.mxu1 }
 0x208   :  { %v534_v52 = vmul.f32 -1.442695, %v339_v50 }
 0x20a   :  { %676 = vpow2.f32 %v534_v52 }
 0x213   :  { %v675_v53 = vpop.eup %674 }
 0x214   :  { %v348_v54 = vadd.f32 1.0, %v675_v53 }
 0x216   :  { %678 = vrcp.f32 %v348_v54 }
 0x217   :  { %v677_v55 = vpop.eup %676 }
 0x218   :  { %v349_v56 = vadd.f32 1.0, %v677_v55 }
 0x21a   :  { %680 = vrcp.f32 %v349_v56 }
 0x223   :  { %v679_v57 = vpop.eup %678 }
 0x227   :  { %v681_v58 = vpop.eup %680 }
 0x228   :  { %v354_v59 = vpack.c.bf16 %v681_v58, %v679_v57 }
 0x22a   :  { %628 = vmatmul.mubr.bf16.vlgmr.msra.gmra.mxu0 %v354_v59 }
 0x2ea   :  { %v460_v63 = vpop.f32.mrf.mxu0 }
 0x2eb   :  { %v461_v0 = vadd.f32 %v535_v62, %v460_v63 }
 0x2ec   :  { %v629_v1 = vpop.f32.mrf.mxu0 }
 0x2ed   :  { %v470_v2 = vsel %vm469_vm1, %v461_v0, -inf }
 0x2ee   :  { %472 = vmax.xlane.f32.xlu0 %v470_v2  ;;  %v463_v3 = vpop.f32.mrf.mxu0 }
 0x2ef   :  { %v464_v4 = vadd.f32 %v535_v62, %v463_v3 }
 0x2f0   :  { %v630_v5 = vpop.f32.mrf.mxu0 }
 0x2f1   :  { %v471_v6 = vsel %vm469_vm1, %v464_v4, -inf }
 0x2f2   :  { %474 = vmax.xlane.f32.xlu0 %v471_v6 }
 0x377   :  { %v473_v7 = vpop.xlane.xlu0 %472 }
 0x378   :  { %v476_v8 = vsub.f32 %v470_v2, %v473_v7 }
 0x37a   :  { %v478_v9 = vmul.f32 1.442695, %v476_v8 }
 0x37b   :  { %v475_v10 = vpop.xlane.xlu0 %474 }
 0x37c   :  { %v477_v11 = vsub.f32 %v471_v6, %v475_v10  ;;  %682 = vpow2.f32 %v478_v9 }
 0x37e   :  { %v480_v12 = vmul.f32 1.442695, %v477_v11 }
 0x380   :  { %684 = vpow2.f32 %v480_v12 }
 0x389   :  { %v683_v13 = vpop.eup %682 }
 0x38a   :  { %482 = vadd.xlane.f32.xlu1 %v683_v13 }
 0x38d   :  { %v685_v14 = vpop.eup %684 }
 0x38e   :  { %484 = vadd.xlane.f32.xlu1 %v685_v14 }
 0x413   :  { %v483_v15 = vpop.xlane.xlu1 %482 }
 0x414   :  { %686 = vlog2.f32 %v483_v15 }
 0x417   :  { %v485_v16 = vpop.xlane.xlu1 %484 }
 0x418   :  { %688 = vlog2.f32 %v485_v16 }
 0x421   :  { %v687_v17 = vpop.eup %686 }
 0x422   :  { %v487_v18 = vmul.f32 0.6931472, %v687_v17 }
 0x424   :  { %v490_v19 = vsub.f32 %v476_v8, %v487_v18 }
 0x425   :  { %v689_v20 = vpop.eup %688 }
 0x426   :  { %492 = vst [vmem:[#allocation11] sm:$0xff] %v490_v19  ;;  %v489_v21 = vmul.f32 0.6931472, %v689_v20 }
 0x428   :  { %v491_v22 = vsub.f32 %v477_v11, %v489_v21 }
 0x42a   :  { %493 = vst [vmem:[#allocation11 + $0x8] sm:$0xff] %v491_v22 }
 0x42b   :  { %498 = vsyncadd [#allocation5], 128  ;;  %s808_s6 = smov [#allocation11]  }
 0x42c   :  { %s499_s26 = sshll.u32 %s808_s6, 4  ;;  %s500_s26 = int_to_ptr.vmem [resolvable:$true] %s499_s26 }
 0x42d   :  { %s770_s27 = scalar_lea.vmem %s500_s26, 128  ;;  %s774_s28 = scalar_lea.vmem %s500_s26, 256 }
 0x42e   :  { %p771_p6 = scmp.ne.s32.totalorder %s500_s26, %s770_s27  ;;  %p775_p7 = scmp.lt.s32.totalorder %s500_s26, %s500_s26 }
 0x42f   :  { %p776_p8 = scmp.lt.s32.totalorder %s774_s28, %s770_s27 }
 0x431   :  { %p777_p9 = por %p776_p8, %p775_p7 }
 0x433   :  { %p778_p10 = pnand %p777_p9, %p771_p6 }
 0x435   :  { %781 = shalt.err (!%p778_p10)
}
 0x436   :  { %505 = dma.vmem_to_hbm [thread:$0]  %s500_s26, 128, %s925_s7, [#allocation5], %s802_s12, %s802_s12, %s803_s13  }
 0x437   :  { %796 = dma.done.wait [#allocation5], 256  }
 0x438   :  { %797 = vsyncadd [#allocation5], 4294967040 }
 0x439   :  { %509 = vsyncpa [#allocation4], 1 }
 0x43a   :  { %510 = vsyncpa [#allocation7], 1 }
 0x43b   :  { %511 = vsyncpa [#allocation10], 1 }
 0x43c   :  { %512 = vsyncpa [#allocation5], 1 }

</bundles_post_ra>
